<compile_context>
chip_gen: v7x
topology: tpu7x:2x2x1
jax: 0.10.0
libtpu: 0.0.40
codegen_flags: <defaults>
</compile_context>

<pallas_src>
import jax
import jax.numpy as jnp
from jax import lax
from jax.experimental import pallas as pl
from jax.experimental.pallas import tpu as pltpu


def _round_up(x, m):
    return ((x + m - 1) // m) * m


def _ce_kernel_classes_on_sublanes(pred_ref, tgt_ref, w_ref, loss_ref, wsum_ref):
    """C < 128 path: logits tile is [C, block_b] (classes on sublanes, batch on lanes)."""
    step = pl.program_id(1)

    @pl.when(step == 0)
    def _init():
        loss_ref[...] = jnp.zeros_like(loss_ref)
        wsum_ref[...] = jnp.zeros_like(wsum_ref)

    logits = pred_ref[...].astype(jnp.float32)          # [C, bb] fp32 compute
    tgt = tgt_ref[...]                                  # [1, bb] int32 (-1 == pad)
    c, bb = logits.shape

    # Numerically-stable logsumexp along the class (sublane) axis.
    m = jnp.max(logits, axis=0, keepdims=True)          # [1, bb]
    shifted = logits - m
    lse = jnp.log(jnp.sum(jnp.exp(shifted), axis=0, keepdims=True))  # [1, bb]

    # One-hot select of the target class (no gather); padded cols (tgt == -1)
    # give an all-false onehot -> zero selected weight -> zero contribution.
    cls = lax.broadcasted_iota(jnp.int32, (c, bb), 0)
    onehot = cls == tgt                                 # [C, bb]
    sel = jnp.sum(jnp.where(onehot, shifted, 0.0), axis=0, keepdims=True)       # [1, bb]
    w_row = jnp.sum(jnp.where(onehot, w_ref[...], 0.0), axis=0, keepdims=True)  # [1, bb]

    nll = lse - sel                                     # [1, bb]
    loss_ref[...] += nll * w_row                        # per-lane partial sums
    wsum_ref[...] += w_row


def _ce_kernel_classes_on_lanes(pred_ref, tgt_ref, w_ref, loss_ref, wsum_ref):
    """C >= 128 path: logits tile is [block_b, C] (batch on sublanes, classes on lanes)."""
    step = pl.program_id(1)

    @pl.when(step == 0)
    def _init():
        loss_ref[...] = jnp.zeros_like(loss_ref)
        wsum_ref[...] = jnp.zeros_like(wsum_ref)

    logits = pred_ref[...].astype(jnp.float32)          # [bb, C] fp32 compute
    tgt = tgt_ref[...]                                  # [bb, 1] int32 (-1 == pad)
    bb, c = logits.shape

    m = jnp.max(logits, axis=-1, keepdims=True)
    shifted = logits - m
    lse = jnp.log(jnp.sum(jnp.exp(shifted), axis=-1, keepdims=True))  # [bb, 1]

    cls = lax.broadcasted_iota(jnp.int32, (bb, c), 1)
    onehot = cls == tgt                                 # [bb, C]
    sel = jnp.sum(jnp.where(onehot, shifted, 0.0), axis=-1, keepdims=True)       # [bb, 1]
    w_row = jnp.sum(jnp.where(onehot, w_ref[...], 0.0), axis=-1, keepdims=True)  # [bb, 1]

    nll = lse - sel                                     # [bb, 1]
    loss_ref[...] += nll * w_row                        # per-row partial sums
    wsum_ref[...] += w_row


def cross_entropy_loss(pred, target, weight=None, *, block_b=None):
    """Fused F.cross_entropy(pred, target, weight) with 'mean' reduction."""
    B, C = pred.shape
    itemsize = jnp.dtype(pred.dtype).itemsize

    if weight is None:
        weight = jnp.ones((C,), jnp.float32)            # uniform == plain mean
    weight = jnp.asarray(weight, jnp.float32)
    target = jnp.asarray(target, jnp.int32)

    transposed = C < 128                                # lane-dense small-C layout
    row_mult = 128 if transposed else 8                 # batch-axis granularity

    if block_b is None:
        # ~2 MiB logits tile (>= the measured >=85%-of-roofline tile size) so a
        # double-buffered tile stays well under every chip's scoped-VMEM
        # default; for tiny C this lands at thousands of rows, amortizing the
        # ~0.35 us/step grid overhead.
        budget_rows = (2 * 1024 * 1024) // max(1, C * itemsize)
        block_b = max(row_mult, (budget_rows // row_mult) * row_mult)
        block_b = min(block_b, 8192)
    block_b = max(row_mult, _round_up(block_b, row_mult))
    block_b = min(block_b, _round_up(B, row_mult))      # never wider than the batch

    num_tiles = -(-B // block_b)
    num_par = 2 if num_tiles >= 2 else 1                # v7x: one partial per TensorCore
    steps = -(-num_tiles // num_par)
    B_pad = num_par * steps * block_b

    if transposed:
        pred_in = jnp.pad(pred.T, ((0, 0), (0, B_pad - B)))               # [C, B_pad]
        tgt_in = jnp.pad(target.reshape(1, B), ((0, 0), (0, B_pad - B)),
                         constant_values=-1)                              # [1, B_pad]
        w_in = weight.reshape(C, 1)
        in_specs = [
            pl.BlockSpec((C, block_b), lambda p, i: (0, p * steps + i)),  # logits tile
            pl.BlockSpec((1, block_b), lambda p, i: (0, p * steps + i)),  # targets tile
            pl.BlockSpec((C, 1), lambda p, i: (0, 0)),                    # weights (resident)
        ]
        out_shape = (jax.ShapeDtypeStruct((1, num_par * block_b), jnp.float32),
                     jax.ShapeDtypeStruct((1, num_par * block_b), jnp.float32))
        out_specs = (pl.BlockSpec((1, block_b), lambda p, i: (0, p)),
                     pl.BlockSpec((1, block_b), lambda p, i: (0, p)))
        kernel = _ce_kernel_classes_on_sublanes
    else:
        pred_in = jnp.pad(pred, ((0, B_pad - B), (0, 0)))                 # [B_pad, C]
        tgt_in = jnp.pad(target.reshape(B, 1), ((0, B_pad - B), (0, 0)),
                         constant_values=-1)                              # [B_pad, 1]
        w_in = weight.reshape(1, C)
        in_specs = [
            pl.BlockSpec((block_b, C), lambda p, i: (p * steps + i, 0)),
            pl.BlockSpec((block_b, 1), lambda p, i: (p * steps + i, 0)),
            pl.BlockSpec((1, C), lambda p, i: (0, 0)),
        ]
        out_shape = (jax.ShapeDtypeStruct((num_par * block_b, 1), jnp.float32),
                     jax.ShapeDtypeStruct((num_par * block_b, 1), jnp.float32))
        out_specs = (pl.BlockSpec((block_b, 1), lambda p, i: (p, 0)),
                     pl.BlockSpec((block_b, 1), lambda p, i: (p, 0)))
        kernel = _ce_kernel_classes_on_lanes

    tile_bytes = block_b * C * itemsize
    vmem_limit = int(min(64 << 20, max(16 << 20, 4 * tile_bytes + (1 << 20))))
    cost = pl.CostEstimate(
        flops=7 * B_pad * C,
        transcendentals=B_pad * C + B_pad,
        bytes_accessed=B_pad * C * itemsize + B_pad * 8 + C * 4
                       + 2 * num_par * block_b * 4,
    )

    loss_parts, w_parts = pl.pallas_call(
        kernel,
        out_shape=out_shape,
        grid_spec=pltpu.PrefetchScalarGridSpec(
            num_scalar_prefetch=0,
            grid=(num_par, steps),           # (parallel partials, batch tiles per core)
            in_specs=in_specs,
            out_specs=out_specs,
        ),
        compiler_params=pltpu.CompilerParams(
            dimension_semantics=("parallel", "arbitrary"),
            vmem_limit_bytes=vmem_limit,
        ),
        cost_estimate=cost,
    )(pred_in, tgt_in, w_in)

    # Tiny tree-reduce + divide in the wrapper (avoids one long serial fp32
    # accumulation chain).  A fully-masked batch gives 0/0 -> NaN, matching
    # torch's F.cross_entropy behavior.
    return jnp.sum(loss_parts) / jnp.sum(w_parts)


def cross_entropy_ref(pred, target, weight=None):
    """Pure-JAX reference (matches torch.nn.functional.cross_entropy, 'mean')."""
    logp = jax.nn.log_softmax(pred.astype(jnp.float32), axis=-1)
    nll = -jnp.take_along_axis(logp, target[:, None].astype(jnp.int32), axis=-1)[:, 0]
    if weight is None:
        return jnp.mean(nll)
    w = jnp.asarray(weight, jnp.float32)[target]
    return jnp.sum(nll * w) / jnp.sum(w)


if __name__ == "__main__":
    key = jax.random.PRNGKey(0)
    ks = jax.random.split(key, 8)

    # Case 1: module default (weight=None), small C -> lane-dense (transposed) path.
    B, C = 8, 16
    pred = jax.random.normal(ks[0], (B, C), dtype=jnp.float32)
    tgt = jax.random.randint(ks[1], (B,), 0, C)
    out = jax.block_until_ready(cross_entropy_loss(pred, tgt))
    ref = cross_entropy_ref(pred, tgt)
    assert jnp.allclose(out, ref, atol=1e-5, rtol=1e-5), (out, ref)

    # Case 2: class weights, ragged batch, multi-tile grid -> exercises the
    # two-way parallel partial sums (v7x dual-TC path) + accumulation steps.
    B2, C2 = 300, 16
    pred2 = jax.random.normal(ks[2], (B2, C2), dtype=jnp.float32)
    tgt2 = jax.random.randint(ks[3], (B2,), 0, C2)
    w2 = jax.random.uniform(ks[4], (C2,), jnp.float32, 0.5, 1.5)
    out2 = jax.block_until_ready(cross_entropy_loss(pred2, tgt2, w2, block_b=128))
    ref2 = cross_entropy_ref(pred2, tgt2, w2)
    assert jnp.allclose(out2, ref2, atol=1e-5, rtol=1e-5), (out2, ref2)

    # Case 3: C >= 128 -> classes-on-lanes path, multi-tile, weighted.
    B3, C3 = 40, 160
    pred3 = jax.random.normal(ks[5], (B3, C3), dtype=jnp.float32)
    tgt3 = jax.random.randint(ks[6], (B3,), 0, C3)
    w3 = jax.random.uniform(ks[7], (C3,), jnp.float32, 0.5, 1.5)
    out3 = jax.block_until_ready(cross_entropy_loss(pred3, tgt3, w3, block_b=16))
    ref3 = cross_entropy_ref(pred3, tgt3, w3)
    assert jnp.allclose(out3, ref3, atol=1e-5, rtol=1e-5), (out3, ref3)

    # Case 4: bf16 logits stay bf16 in HBM (halved read bytes), fp32 in-kernel.
    pred4 = pred2.astype(jnp.bfloat16)
    out4 = jax.block_until_ready(cross_entropy_loss(pred4, tgt2, w2))
    ref4 = cross_entropy_ref(pred4, tgt2, w2)
    assert jnp.allclose(out4, ref4, atol=1e-4, rtol=1e-4), (out4, ref4)

    print("KERNEL_OK")
</pallas_src>

<mosaic_0001>
module attributes {stable_mosaic.version = 11 : i64} {
  func.func @_ce_kernel_classes_on_sublanes(%arg0: i32, %arg1: i32, %arg2: memref<16x128xf32, #tpu.memory_space<vmem>>, %arg3: memref<1x128xi32, #tpu.memory_space<vmem>>, %arg4: memref<16x1xf32, #tpu.memory_space<vmem>>, %arg5: memref<1x128xf32, #tpu.memory_space<vmem>>, %arg6: memref<1x128xf32, #tpu.memory_space<vmem>>) attributes {dimension_semantics = [#tpu.dimension_semantics<parallel>, #tpu.dimension_semantics<arbitrary>], iteration_bounds = array<i64: 1, 1>, scalar_prefetch = 0 : i64, scratch_operands = 0 : i64, tpu.core_type = #tpu.core_type<tc>, window_params = [{transform_indices = @transform_0, window_bounds = array<i64: 16, 128>}, {transform_indices = @transform_1, window_bounds = array<i64: 1, 128>}, {pipeline_mode = #tpu.pipeline_mode<synchronous>, transform_indices = @transform_2, window_bounds = array<i64: 16, 1>}, {transform_indices = @transform_3, window_bounds = array<i64: 1, 128>}, {transform_indices = @transform_4, window_bounds = array<i64: 1, 128>}]} {
    %c0_i32 = arith.constant 0 : i32
    %0 = arith.cmpi eq, %arg1, %c0_i32 : i32
    %1 = arith.extui %0 : i1 to i32
    %c0_i32_0 = arith.constant 0 : i32
    %2 = arith.cmpi ne, %1, %c0_i32_0 : i32
    scf.if %2 {
      %cst_19 = arith.constant 0.000000e+00 : f32
      %35 = vector.broadcast %cst_19 : f32 to vector<1x128xf32>
      %c0_20 = arith.constant 0 : index
      %c0_21 = arith.constant 0 : index
      %36 = vector.load %arg5[%c0_20, %c0_21] : memref<1x128xf32, #tpu.memory_space<vmem>>, vector<1x128xf32>
      tpu.vector_store %arg5[%c0_20, %c0_21], %35 {strides = array<i32>} : memref<1x128xf32, #tpu.memory_space<vmem>>, vector<1x128xf32>,
      %cst_22 = arith.constant 0.000000e+00 : f32
      %37 = vector.broadcast %cst_22 : f32 to vector<1x128xf32>
      %c0_23 = arith.constant 0 : index
      %c0_24 = arith.constant 0 : index
      %38 = vector.load %arg6[%c0_23, %c0_24] : memref<1x128xf32, #tpu.memory_space<vmem>>, vector<1x128xf32>
      tpu.vector_store %arg6[%c0_23, %c0_24], %37 {strides = array<i32>} : memref<1x128xf32, #tpu.memory_space<vmem>>, vector<1x128xf32>,
    } else {
    }
    %c0 = arith.constant 0 : index
    %c0_1 = arith.constant 0 : index
    %3 = vector.load %arg2[%c0, %c0_1] : memref<16x128xf32, #tpu.memory_space<vmem>>, vector<16x128xf32>
    %c0_2 = arith.constant 0 : index
    %c0_3 = arith.constant 0 : index
    %4 = vector.load %arg3[%c0_2, %c0_3] : memref<1x128xi32, #tpu.memory_space<vmem>>, vector<1x128xi32>
    %cst = arith.constant dense<0xFF800000> : vector<128xf32>
    %5 = vector.multi_reduction <maximumf>, %3, %cst [0] : vector<16x128xf32> to vector<128xf32>
    %6 = vector.shape_cast %5 : vector<128xf32> to vector<1x128xf32>
    %7 = vector.broadcast %6 : vector<1x128xf32> to vector<16x128xf32>
    %8 = arith.subf %3, %7 : vector<16x128xf32>
    %9 = math.exp %8 : vector<16x128xf32>
    %cst_4 = arith.constant dense<0.000000e+00> : vector<128xf32>
    %10 = vector.multi_reduction <add>, %9, %cst_4 [0] : vector<16x128xf32> to vector<128xf32>
    %11 = vector.shape_cast %10 : vector<128xf32> to vector<1x128xf32>
    %12 = math.log %11 : vector<1x128xf32>
    %13 = tpu.iota {dimensions = array<i32: 0>} : vector<16x128xi32>
    %14 = vector.broadcast %4 : vector<1x128xi32> to vector<16x128xi32>
    %15 = arith.cmpi eq, %13, %14 : vector<16x128xi32>
    %cst_5 = arith.constant 0.000000e+00 : f32
    %16 = vector.broadcast %cst_5 : f32 to vector<16x128xf32>
    %17 = arith.select %15, %8, %16 : vector<16x128xi1>, vector<16x128xf32>
    %cst_6 = arith.constant dense<0.000000e+00> : vector<128xf32>
    %18 = vector.multi_reduction <add>, %17, %cst_6 [0] : vector<16x128xf32> to vector<128xf32>
    %19 = vector.shape_cast %18 : vector<128xf32> to vector<1x128xf32>
    %c0_7 = arith.constant 0 : index
    %c0_8 = arith.constant 0 : index
    %20 = vector.load %arg4[%c0_7, %c0_8] : memref<16x1xf32, #tpu.memory_space<vmem>>, vector<16x1xf32>
    %cst_9 = arith.constant 0.000000e+00 : f32
    %21 = vector.shape_cast %20 : vector<16x1xf32> to vector<16x1xf32>
    %22 = vector.broadcast %21 : vector<16x1xf32> to vector<16x128xf32>
    %23 = vector.broadcast %cst_9 : f32 to vector<16x128xf32>
    %24 = arith.select %15, %22, %23 : vector<16x128xi1>, vector<16x128xf32>
    %cst_10 = arith.constant dense<0.000000e+00> : vector<128xf32>
    %25 = vector.multi_reduction <add>, %24, %cst_10 [0] : vector<16x128xf32> to vector<128xf32>
    %26 = vector.shape_cast %25 : vector<128xf32> to vector<1x128xf32>
    %27 = arith.subf %12, %19 : vector<1x128xf32>
    %c0_11 = arith.constant 0 : index
    %c0_12 = arith.constant 0 : index
    %28 = vector.load %arg5[%c0_11, %c0_12] : memref<1x128xf32, #tpu.memory_space<vmem>>, vector<1x128xf32>
    %29 = arith.mulf %27, %26 : vector<1x128xf32>
    %30 = arith.addf %28, %29 : vector<1x128xf32>
    %c0_13 = arith.constant 0 : index
    %c0_14 = arith.constant 0 : index
    %31 = vector.load %arg5[%c0_13, %c0_14] : memref<1x128xf32, #tpu.memory_space<vmem>>, vector<1x128xf32>
    tpu.vector_store %arg5[%c0_13, %c0_14], %30 {strides = array<i32>} : memref<1x128xf32, #tpu.memory_space<vmem>>, vector<1x128xf32>,
    %c0_15 = arith.constant 0 : index
    %c0_16 = arith.constant 0 : index
    %32 = vector.load %arg6[%c0_15, %c0_16] : memref<1x128xf32, #tpu.memory_space<vmem>>, vector<1x128xf32>
    %33 = arith.addf %32, %26 : vector<1x128xf32>
    %c0_17 = arith.constant 0 : index
    %c0_18 = arith.constant 0 : index
    %34 = vector.load %arg6[%c0_17, %c0_18] : memref<1x128xf32, #tpu.memory_space<vmem>>, vector<1x128xf32>
    tpu.vector_store %arg6[%c0_17, %c0_18], %33 {strides = array<i32>} : memref<1x128xf32, #tpu.memory_space<vmem>>, vector<1x128xf32>,
    return
  }
  func.func @transform_0(%arg0: i32, %arg1: i32) -> (i32, i32) {
    %c1_i32 = arith.constant 1 : i32
    %0 = arith.muli %arg0, %c1_i32 : i32
    %1 = arith.addi %0, %arg1 : i32
    %c0_i32 = arith.constant 0 : i32
    %c0_i32_0 = arith.constant 0 : i32
    return %c0_i32, %1 : i32, i32
  }
  func.func @transform_1(%arg0: i32, %arg1: i32) -> (i32, i32) {
    %c1_i32 = arith.constant 1 : i32
    %0 = arith.muli %arg0, %c1_i32 : i32
    %1 = arith.addi %0, %arg1 : i32
    %c0_i32 = arith.constant 0 : i32
    %c0_i32_0 = arith.constant 0 : i32
    return %c0_i32, %1 : i32, i32
  }
  func.func @transform_2(%arg0: i32, %arg1: i32) -> (i32, i32) {
    %c0_i32 = arith.constant 0 : i32
    %c0_i32_0 = arith.constant 0 : i32
    %c0_i32_1 = arith.constant 0 : i32
    return %c0_i32, %c0_i32_0 : i32, i32
  }
  func.func @transform_3(%arg0: i32, %arg1: i32) -> (i32, i32) {
    %c0_i32 = arith.constant 0 : i32
    %c0_i32_0 = arith.constant 0 : i32
    return %c0_i32, %arg0 : i32, i32
  }
  func.func @transform_4(%arg0: i32, %arg1: i32) -> (i32, i32) {
    %c0_i32 = arith.constant 0 : i32
    %c0_i32_0 = arith.constant 0 : i32
    return %c0_i32, %arg0 : i32, i32
  }
}

</mosaic_0001>

<bundles_post_ra>
// kernel: tpu_custom_call.1
= control target key start
LH: loop header
LB: loop body
LE: loop exit
PB: predicated region body
PF: predicated region fallthrough
CT: control target
= control target key end

     0   :  { %10 = vsyncpa [#allocation3], 0  ;;  %v224_v1 = vmov 0   ;;  %s302_s0 = inlined_call_operand.vmem [shape: f32[16,128], index: 0, kind: input, shape index: {}]   ;;  %s303_s1 = inlined_call_operand.vmem [shape: s32[1,128], index: 1, kind: input, shape index: {}]   ;;  %s304_s2 = inlined_call_operand.vmem [shape: f32[16,1], index: 2, kind: input, shape index: {}]   ;;  %s305_s3 = inlined_call_operand.hbm [shape: f32[1,128], index: 3, kind: output, shape index: {0}]   ;;  %s306_s4 = inlined_call_operand.hbm [shape: f32[1,128], index: 4, kind: output, shape index: {1}]  }
   0x1   :  { %v98_v0 = vld [vmem:[%s304_s2] sm:$0xff]  ;;  %169 = vset.pattern.permute.xlu0 %v224_v1 }
   0x2   :  { %11 = vsyncpa [#allocation5], 0  ;;  %102 = vperm.xlu0 %169, %v98_v0   ;;  %v99_v2 = vld [vmem:[%s304_s2 + $0x8] sm:$0xff]  ;;  %v225_v3 = vmov 0.0   ;;  %v55_v4 = vld [vmem:[%s302_s0] sm:$0xff]  ;;  %v80_v19 = vlaneseq  ;;  %s227_s24 = smov [#allocation2]  }
   0x3   :  { %53 = vst [vmem:[#allocation2] sm:$0x1] %v225_v3  ;;  %54 = vst [vmem:[#allocation4] sm:$0x1] %v225_v3  ;;  %v56_v5 = vld [vmem:[%s302_s0 + $0x8] sm:$0xff]  ;;  %s133_s25 = sshll.u32 %s227_s24, 4  ;;  %s270_s25 = int_to_ptr.vmem [resolvable:$true] %s133_s25 }
   0x4   :  { %v58_v6 = vmax.f32 %v55_v4, %v56_v5  ;;  %v81_v21 = vshrl.u32 %v80_v19, 7  ;;  %v164_v25 = vld [vmem:[%s303_s1] ss:$0 sm:$0xff]  ;;  %s226_s1 = smov [#allocation4]  }
   0x5   :  { %s143_s23 = sshll.u32 %s226_s1, 4  ;;  %s144_s23 = int_to_ptr.vmem [resolvable:$true] %s143_s23 }
   0x6   :  { %107 = vperm.xlu0 %169, %v99_v2   ;;  %v59_v7 = vrot.slane %v58_v6, 4  ;;  %v82_v23 = vadd.s32 8, %v81_v21  ;;  %vm87_vm1 = vcmp.eq.s32.totalorder %v81_v21, %v164_v25  ;;  %s176_s26 = scalar_lea.vmem %s144_s23, 16  ;;  %s180_s27 = scalar_lea.vmem %s144_s23, 32 }
   0x7   :  { %p177_p0 = scmp.ne.s32.totalorder %s144_s23, %s176_s26  ;;  %p181_p1 = scmp.lt.s32.totalorder %s144_s23, %s144_s23 }
   0x8   :  { %v60_v8 = vmax.f32 %v58_v6, %v59_v7  ;;  %vm88_vm0 = vcmp.eq.s32.totalorder %v82_v23, %v164_v25  ;;  %p182_p2 = scmp.lt.s32.totalorder %s180_s27, %s176_s26 }
   0xa   :  { %v61_v9 = vrot.slane %v60_v8, 2  ;;  %v124_v52 = vld [vmem:[#allocation4] sm:$0x1]  ;;  %v120_v54 = vld [vmem:[#allocation2] sm:$0x1]  ;;  %p183_p3 = por %p182_p2, %p181_p1 }
   0xc   :  { %v62_v10 = vmax.f32 %v60_v8, %v61_v9  ;;  %p184_p4 = pnand %p183_p3, %p177_p0 }
   0xe   :  { %v63_v11 = vrot.slane %v62_v10, 1 }
  0x10   :  { %v64_v12 = vmax.f32 %v62_v10, %v63_v11 }
  0x12   :  { %v65_v13 = vsub.f32 %v55_v4, %v64_v12  ;;  %v66_v14 = vsub.f32 %v56_v5, %v64_v12 }
  0x14   :  { %v67_v15 = vmul.f32 1.442695, %v65_v13  ;;  %v69_v16 = vmul.f32 1.442695, %v66_v14  ;;  %v89_v27 = vsel %vm87_vm1, %v65_v13, 0.0  ;;  %v90_v28 = vsel %vm88_vm0, %v66_v14, 0.0 }
  0x15   :  { %v91_v30 = vadd.f32 %v90_v28, %v89_v27 }
  0x16   :  { %170 = vpow2.f32 %v67_v15 }
  0x17   :  { %172 = vpow2.f32 %v69_v16  ;;  %v92_v32 = vrot.slane %v91_v30, 4 }
  0x19   :  { %v93_v34 = vadd.f32 %v92_v32, %v91_v30 }
  0x1b   :  { %v94_v36 = vrot.slane %v93_v34, 2 }
  0x1d   :  { %v95_v38 = vadd.f32 %v94_v36, %v93_v34 }
  0x1f   :  { %v96_v42 = vrot.slane %v95_v38, 1 }
  0x20   :  { %v171_v17 = vpop.eup %170 }
  0x21   :  { %v173_v18 = vpop.eup %172  ;;  %v97_v46 = vadd.f32 %v96_v42, %v95_v38 }
  0x22   :  { %v71_v20 = vadd.f32 %v173_v18, %v171_v17 }
  0x24   :  { %v72_v22 = vrot.slane %v71_v20, 4 }
  0x26   :  { %v73_v24 = vadd.f32 %v72_v22, %v71_v20 }
  0x28   :  { %v74_v26 = vrot.slane %v73_v24, 2 }
  0x2a   :  { %v75_v29 = vadd.f32 %v74_v26, %v73_v24 }
  0x2c   :  { %v76_v31 = vrot.slane %v75_v29, 1 }
  0x2e   :  { %v77_v33 = vadd.f32 %v76_v31, %v75_v29 }
  0x30   :  { %174 = vlog2.f32 %v77_v33 }
  0x3a   :  { %v175_v44 = vpop.eup %174 }
  0x3b   :  { %v79_v48 = vmul.f32 0.6931472, %v175_v44 }
  0x3d   :  { %v119_v51 = vsub.f32 %v79_v48, %v97_v46 }
  0x81   :  { %v103_v35 = vpop.permute.xlu0 %102 }
  0x82   :  { %v110_v39 = vsel %vm87_vm1, %v103_v35, 0.0 }
  0x85   :  { %v108_v37 = vpop.permute.xlu0 %107 }
  0x86   :  { %v111_v40 = vsel %vm88_vm0, %v108_v37, 0.0 }
  0x87   :  { %v112_v41 = vadd.f32 %v111_v40, %v110_v39 }
  0x89   :  { %v113_v43 = vrot.slane %v112_v41, 4 }
  0x8b   :  { %v114_v45 = vadd.f32 %v113_v43, %v112_v41 }
  0x8d   :  { %v115_v47 = vrot.slane %v114_v45, 2 }
  0x8f   :  { %v116_v49 = vadd.f32 %v115_v47, %v114_v45 }
  0x91   :  { %v117_v50 = vrot.slane %v116_v49, 1 }
  0x93   :  { %v118_v53 = vadd.f32 %v117_v50, %v116_v49 }
  0x95   :  { %v121_v55 = vmul.f32 %v119_v51, %v118_v53  ;;  %v125_v56 = vadd.f32 %v124_v52, %v118_v53 }
  0x97   :  { %v122_v57 = vadd.f32 %v121_v55, %v120_v54  ;;  %126 = vst [vmem:[#allocation4] sm:$0x1] %v125_v56 }
  0x98   :  { %187 = shalt.err (!%p184_p4)
}
  0x99   :  { %s188_s30 = scalar_lea.hbm %s306_s4, 16 }
  0x9a   :  { %p189_p5 = scmp.ne.s32.totalorder %s306_s4, %s188_s30  ;;  %p192_p6 = scmp.lt.u32.totalorder %s188_s30, %s306_s4 }
  0x9c   :  { %p194_p7 = pnand %p192_p6, %p189_p5 }
  0x9e   :  { %197 = shalt.err (!%p194_p7)
}
  0x9f   :  { %146 = dma.vmem_to_hbm [thread:$0]  %s144_s23, 16, %s306_s4, [#allocation5]   ;;  %123 = vst [vmem:[#allocation2] sm:$0x1] %v122_v57 }
  0xa0   :  { %s198_s11 = scalar_lea.vmem %s270_s25, 16  ;;  %s202_s12 = scalar_lea.vmem %s270_s25, 32 }
  0xa1   :  { %p199_p8 = scmp.ne.s32.totalorder %s270_s25, %s198_s11  ;;  %p203_p9 = scmp.lt.s32.totalorder %s270_s25, %s270_s25 }
  0xa2   :  { %p204_p10 = scmp.lt.s32.totalorder %s202_s12, %s198_s11 }
  0xa4   :  { %p205_p11 = por %p204_p10, %p203_p9 }
  0xa6   :  { %p206_p12 = pnand %p205_p11, %p199_p8 }
  0xa8   :  { %209 = shalt.err (!%p206_p12)
}
  0xa9   :  { %s210_s15 = scalar_lea.hbm %s305_s3, 16 }
  0xaa   :  { %p211_p13 = scmp.ne.s32.totalorder %s305_s3, %s210_s15  ;;  %p214_p0 = scmp.lt.u32.totalorder %s210_s15, %s305_s3 }
  0xac   :  { %p216_p1 = pnand %p214_p0, %p211_p13 }
  0xae   :  { %219 = shalt.err (!%p216_p1)
}
  0xaf   :  { %136 = dma.vmem_to_hbm [thread:$0]  %s270_s25, 16, %s305_s3, [#allocation3]  }
  0xb0   :  { %220 = dma.done.wait [#allocation3], 16  }
  0xb1   :  { %221 = vsyncadd [#allocation3], 4294967280 }
  0xb2   :  { %222 = dma.done.wait [#allocation5], 16  }
  0xb3   :  { %223 = vsyncadd [#allocation5], 4294967280 }
  0xb4   :  { %153 = vsyncpa [#allocation3], 1 }
  0xb5   :  { %154 = vsyncpa [#allocation5], 1 }

</bundles_post_ra>
